<compile_context>
chip_gen: v6e
topology: v6e:2x2x1
jax: 0.10.0
libtpu: 0.0.40
codegen_flags: <defaults>
</compile_context>

<pallas_src>
import functools

import jax
import jax.numpy as jnp
from jax.experimental import pallas as pl
from jax.experimental.pallas import tpu as pltpu

IN_DIM = 2
HID_DIM = 16
OUT_DIM = 1


def _round_up(n, m):
    return ((n + m - 1) // m) * m


def mlp_kernel(xt_ref, w1_ref, b1_ref, w2_ref, b2_ref, o_ref):
    # xt: (IN, TB) lane-dense batch tile
    # w1: (HID, IN), b1: (HID, 1), w2: (HID, OUT)=(16,1), b2: (1, 1)
    x0 = xt_ref[0:1, :]                      # (1, TB)
    x1 = xt_ref[1:2, :]                      # (1, TB)
    w1 = w1_ref[...]                         # (16, 2)
    b1 = b1_ref[...]                         # (16, 1)
    w2 = w2_ref[...]                         # (16, 1)
    b2 = b2_ref[...]                         # (1, 1)

    # fc1 + ReLU, entirely on the VPU: h[j, :] = relu(w1[j,0]*x0 + w1[j,1]*x1 + b1[j])
    h = jnp.maximum(w1[:, 0:1] * x0 + w1[:, 1:2] * x1 + b1, 0.0)   # (16, TB)

    # fc2: weighted sum over the 16 hidden rows (sublane reduce on the XLU) + bias.
    y = jnp.sum(w2 * h, axis=0, keepdims=True) + b2                # (1, TB)

    o_ref[...] = y.astype(o_ref.dtype)


@functools.partial(jax.jit, static_argnames=("block_b",))
def simple_net_forward(x, w1, b1, w2, b2, *, block_b=8192):
    """x: (B, IN) f32. w1: (HID, IN), b1: (HID, 1), w2: (HID, OUT), b2: (1, OUT)."""
    B = x.shape[0]

    # Batch tile: lane-aligned (multiple of 128), capped by block_b, padded batch.
    TB = min(block_b, _round_up(B, 128))
    Bp = _round_up(B, TB)

    # Transposed, lane-dense layout: (IN, Bp); padded rows are zeros (sliced off below).
    xt = jnp.transpose(x)                                   # (IN, B)
    xt = jnp.pad(xt, ((0, 0), (0, Bp - B)))                 # (IN, Bp)

    grid = (pl.cdiv(Bp, TB),)
    yt = pl.pallas_call(
        mlp_kernel,
        out_shape=jax.ShapeDtypeStruct((OUT_DIM, Bp), x.dtype),
        grid=grid,
        in_specs=[
            pl.BlockSpec((IN_DIM, TB), lambda i: (0, i)),        # x tile (pipelined)
            pl.BlockSpec((HID_DIM, IN_DIM), lambda i: (0, 0)),   # w1 (resident)
            pl.BlockSpec((HID_DIM, 1), lambda i: (0, 0)),        # b1 (resident)
            pl.BlockSpec((HID_DIM, OUT_DIM), lambda i: (0, 0)),  # w2 (resident)
            pl.BlockSpec((1, OUT_DIM), lambda i: (0, 0)),        # b2 (resident)
        ],
        out_specs=pl.BlockSpec((OUT_DIM, TB), lambda i: (0, i)),
        compiler_params=pltpu.CompilerParams(
            dimension_semantics=("parallel",),
        ),
    )(xt, w1, b1, w2, b2)

    # Back to the PyTorch-facing (B, OUT) layout, dropping padded rows.
    return jnp.transpose(yt[:, :B])                          # (B, OUT)


def init_params(key):
    # nn.Linear-style init: U(-1/sqrt(fan_in), 1/sqrt(fan_in)).
    k1, k2, k3, k4 = jax.random.split(key, 4)
    bound1 = 1.0 / jnp.sqrt(IN_DIM)
    bound2 = 1.0 / jnp.sqrt(HID_DIM)
    w1 = jax.random.uniform(k1, (HID_DIM, IN_DIM), jnp.float32, -bound1, bound1)
    b1 = jax.random.uniform(k2, (HID_DIM, 1), jnp.float32, -bound1, bound1)
    w2 = jax.random.uniform(k3, (HID_DIM, OUT_DIM), jnp.float32, -bound2, bound2)
    b2 = jax.random.uniform(k4, (1, OUT_DIM), jnp.float32, -bound2, bound2)
    return w1, b1, w2, b2


def reference_forward(x, w1, b1, w2, b2):
    h = jnp.maximum(x @ w1.T + b1.reshape(1, -1), 0.0)       # (B, HID)
    return h @ w2 + b2.reshape(1, -1)                        # (B, OUT)


if __name__ == "__main__":
    key = jax.random.PRNGKey(0)
    kx, kp = jax.random.split(key)
    w1, b1, w2, b2 = init_params(kp)

    # Small demo batch (single grid step after 128-lane padding).
    B = 8
    x = jax.random.normal(kx, (B, IN_DIM), jnp.float32)
    out = jax.block_until_ready(simple_net_forward(x, w1, b1, w2, b2))
    ref = reference_forward(x, w1, b1, w2, b2)
    assert out.shape == (B, OUT_DIM)
    assert jnp.allclose(out, ref, atol=1e-5, rtol=1e-5)

    # Ragged multi-tile path: B=300 with a 128-row tile -> 3 grid steps + padded tail.
    B2 = 300
    x2 = jax.random.normal(jax.random.PRNGKey(1), (B2, IN_DIM), jnp.float32)
    out2 = jax.block_until_ready(simple_net_forward(x2, w1, b1, w2, b2, block_b=128))
    ref2 = reference_forward(x2, w1, b1, w2, b2)
    assert out2.shape == (B2, OUT_DIM)
    assert jnp.allclose(out2, ref2, atol=1e-5, rtol=1e-5)

    print("KERNEL_OK")
</pallas_src>

<mosaic_0001>
module attributes {stable_mosaic.version = 11 : i64} {
  func.func @mlp_kernel(%arg0: i32, %arg1: memref<2x128xf32, #tpu.memory_space<vmem>>, %arg2: memref<16x2xf32, #tpu.memory_space<vmem>>, %arg3: memref<16x1xf32, #tpu.memory_space<vmem>>, %arg4: memref<16x1xf32, #tpu.memory_space<vmem>>, %arg5: memref<1x1xf32, #tpu.memory_space<vmem>>, %arg6: memref<1x128xf32, #tpu.memory_space<vmem>>) attributes {dimension_semantics = [#tpu.dimension_semantics<parallel>], iteration_bounds = array<i64: 1>, scalar_prefetch = 0 : i64, scratch_operands = 0 : i64, tpu.core_type = #tpu.core_type<tc>, window_params = [{transform_indices = @transform_0, window_bounds = array<i64: 2, 128>}, {pipeline_mode = #tpu.pipeline_mode<synchronous>, transform_indices = @transform_1, window_bounds = array<i64: 16, 2>}, {pipeline_mode = #tpu.pipeline_mode<synchronous>, transform_indices = @transform_2, window_bounds = array<i64: 16, 1>}, {pipeline_mode = #tpu.pipeline_mode<synchronous>, transform_indices = @transform_3, window_bounds = array<i64: 16, 1>}, {pipeline_mode = #tpu.pipeline_mode<synchronous>, transform_indices = @transform_4, window_bounds = array<i64: 1, 1>}, {transform_indices = @transform_5, window_bounds = array<i64: 1, 128>}]} {
    %c0 = arith.constant 0 : index
    %c0_0 = arith.constant 0 : index
    %0 = vector.load %arg1[%c0, %c0_0] : memref<2x128xf32, #tpu.memory_space<vmem>>, vector<1x128xf32>
    %c1 = arith.constant 1 : index
    %c0_1 = arith.constant 0 : index
    %1 = vector.load %arg1[%c1, %c0_1] : memref<2x128xf32, #tpu.memory_space<vmem>>, vector<1x128xf32>
    %c0_2 = arith.constant 0 : index
    %c0_3 = arith.constant 0 : index
    %2 = vector.load %arg2[%c0_2, %c0_3] : memref<16x2xf32, #tpu.memory_space<vmem>>, vector<16x2xf32>
    %c0_4 = arith.constant 0 : index
    %c0_5 = arith.constant 0 : index
    %3 = vector.load %arg3[%c0_4, %c0_5] : memref<16x1xf32, #tpu.memory_space<vmem>>, vector<16x1xf32>
    %c0_6 = arith.constant 0 : index
    %c0_7 = arith.constant 0 : index
    %4 = vector.load %arg4[%c0_6, %c0_7] : memref<16x1xf32, #tpu.memory_space<vmem>>, vector<16x1xf32>
    %c0_8 = arith.constant 0 : index
    %c0_9 = arith.constant 0 : index
    %5 = vector.load %arg5[%c0_8, %c0_9] : memref<1x1xf32, #tpu.memory_space<vmem>>, vector<1x1xf32>
    %6 = vector.extract_strided_slice %2 {offsets = [0, 0], sizes = [16, 1], strides = [1, 1]} : vector<16x2xf32> to vector<16x1xf32>
    %7 = vector.broadcast %6 : vector<16x1xf32> to vector<16x128xf32>
    %8 = vector.broadcast %0 : vector<1x128xf32> to vector<16x128xf32>
    %9 = arith.mulf %7, %8 : vector<16x128xf32>
    %10 = vector.extract_strided_slice %2 {offsets = [0, 1], sizes = [16, 1], strides = [1, 1]} : vector<16x2xf32> to vector<16x1xf32>
    %11 = vector.broadcast %10 : vector<16x1xf32> to vector<16x128xf32>
    %12 = vector.broadcast %1 : vector<1x128xf32> to vector<16x128xf32>
    %13 = arith.mulf %11, %12 : vector<16x128xf32>
    %14 = arith.addf %9, %13 : vector<16x128xf32>
    %15 = vector.broadcast %3 : vector<16x1xf32> to vector<16x128xf32>
    %16 = arith.addf %14, %15 : vector<16x128xf32>
    %cst = arith.constant 0.000000e+00 : f32
    %17 = vector.broadcast %cst : f32 to vector<16x128xf32>
    %18 = arith.maximumf %16, %17 : vector<16x128xf32>
    %19 = vector.broadcast %4 : vector<16x1xf32> to vector<16x128xf32>
    %20 = arith.mulf %19, %18 : vector<16x128xf32>
    %cst_10 = arith.constant dense<0.000000e+00> : vector<128xf32>
    %21 = vector.multi_reduction <add>, %20, %cst_10 [0] : vector<16x128xf32> to vector<128xf32>
    %22 = vector.shape_cast %21 : vector<128xf32> to vector<1x128xf32>
    %23 = vector.broadcast %5 : vector<1x1xf32> to vector<1x128xf32>
    %24 = arith.addf %22, %23 : vector<1x128xf32>
    %c0_11 = arith.constant 0 : index
    %c0_12 = arith.constant 0 : index
    %25 = vector.load %arg6[%c0_11, %c0_12] : memref<1x128xf32, #tpu.memory_space<vmem>>, vector<1x128xf32>
    tpu.vector_store %arg6[%c0_11, %c0_12], %24 {strides = array<i32>} : memref<1x128xf32, #tpu.memory_space<vmem>>, vector<1x128xf32>,
    return
  }
  func.func @transform_0(%arg0: i32) -> (i32, i32) {
    %c0_i32 = arith.constant 0 : i32
    %c0_i32_0 = arith.constant 0 : i32
    return %c0_i32, %arg0 : i32, i32
  }
  func.func @transform_1(%arg0: i32) -> (i32, i32) {
    %c0_i32 = arith.constant 0 : i32
    %c0_i32_0 = arith.constant 0 : i32
    %c0_i32_1 = arith.constant 0 : i32
    return %c0_i32, %c0_i32_0 : i32, i32
  }
  func.func @transform_2(%arg0: i32) -> (i32, i32) {
    %c0_i32 = arith.constant 0 : i32
    %c0_i32_0 = arith.constant 0 : i32
    %c0_i32_1 = arith.constant 0 : i32
    return %c0_i32, %c0_i32_0 : i32, i32
  }
  func.func @transform_3(%arg0: i32) -> (i32, i32) {
    %c0_i32 = arith.constant 0 : i32
    %c0_i32_0 = arith.constant 0 : i32
    %c0_i32_1 = arith.constant 0 : i32
    return %c0_i32, %c0_i32_0 : i32, i32
  }
  func.func @transform_4(%arg0: i32) -> (i32, i32) {
    %c0_i32 = arith.constant 0 : i32
    %c0_i32_0 = arith.constant 0 : i32
    %c0_i32_1 = arith.constant 0 : i32
    return %c0_i32, %c0_i32_0 : i32, i32
  }
  func.func @transform_5(%arg0: i32) -> (i32, i32) {
    %c0_i32 = arith.constant 0 : i32
    %c0_i32_0 = arith.constant 0 : i32
    return %c0_i32, %arg0 : i32, i32
  }
}

</mosaic_0001>

<bundles_post_ra>
// kernel: simple_net_forward.1
= control target key start
LH: loop header
LB: loop body
LE: loop exit
PB: predicated region body
PF: predicated region fallthrough
CT: control target
= control target key end

     0   :  { %v118_v0 = vmov 1   ;;  %v119_v1 = vmov 0   ;;  %v101_v33 = vlaneseq  ;;  %s180_s1 = inlined_call_operand.vmem [shape: f32[16,2], index: 1, kind: input, shape index: {}]   ;;  %s181_s4 = inlined_call_operand.<no memory space> [shape: f32[1,1], index: 4, kind: input, shape index: {}]   ;;  %s182_s2 = inlined_call_operand.vmem [shape: f32[16,1], index: 2, kind: input, shape index: {}]   ;;  %s183_s3 = inlined_call_operand.vmem [shape: f32[16,1], index: 3, kind: input, shape index: {}]   ;;  %s184_s0 = inlined_call_operand.vmem [shape: f32[2,128], index: 0, kind: input, shape index: {}]   ;;  %s185_s5 = inlined_call_operand.vmem [shape: f32[1,128], index: 5, kind: output, shape index: {}]  }
   0x1   :  { %116 = vset.pattern.permute.xlu1 %v118_v0  ;;  %115 = vset.pattern.permute.xlu0 %v119_v1  ;;  %v24_v2 = vld [vmem:[%s180_s1] sm:$0xff]  ;;  %v10_v3 = vstv %s181_s4  ;;  %v25_v4 = vld [vmem:[%s180_s1 + $0x8] sm:$0xff] }
   0x2   :  { %48 = vperm.xlu1 %116, %v24_v2   ;;  %33 = vperm.xlu0 %115, %v24_v2   ;;  %11 = vst [vmem:[#allocation2] sm:$0x1] %v10_v3  ;;  %v26_v5 = vld [vmem:[%s182_s2] sm:$0xff]  ;;  %v27_v6 = vld [vmem:[%s182_s2 + $0x8] sm:$0xff]  ;;  %v102_v36 = vshrl.u32 %v101_v33, 7 }
   0x3   :  { %v28_v7 = vld [vmem:[%s183_s3] sm:$0xff]  ;;  %v29_v8 = vld [vmem:[%s183_s3 + $0x8] sm:$0xff] }
   0x4   :  { %v112_v11 = vld [vmem:[%s184_s0 + $0x1] ss:$0 sm:$0xff]  ;;  %v111_v13 = vld [vmem:[%s184_s0] ss:$0 sm:$0xff]  ;;  %v103_v38 = vsub.s32 0, %v102_v36 }
   0x6   :  { %52 = vperm.xlu1 %116, %v25_v4   ;;  %38 = vperm.xlu0 %115, %v25_v4  }
   0x9   :  { %v30_v9 = vld [vmem:[#allocation2] sm:$0x1] }
   0xa   :  { %117 = vset.pattern.permute.xlu1 %v119_v1  ;;  %65 = vperm.xlu0 %115, %v26_v5  }
   0xb   :  { %70 = vperm.xlu1 %117, %v27_v6  }
   0xe   :  { %79 = vperm.xlu0 %115, %v28_v7  }
   0xf   :  { %84 = vperm.xlu1 %117, %v29_v8  }
  0x12   :  { %98 = vperm.xlu0 %115, %v30_v9  }
  0x7d   :  { %v49_v10 = vpop.permute.xlu1 %48  ;;  %v34_v12 = vpop.permute.xlu0 %33 }
  0x7e   :  { %v59_v14 = vmul.f32 %v112_v11, %v49_v10  ;;  %v45_v15 = vmul.f32 %v111_v13, %v34_v12 }
  0x80   :  { %v61_v20 = vadd.f32 %v59_v14, %v45_v15 }
  0x81   :  { %v53_v16 = vpop.permute.xlu1 %52  ;;  %v39_v17 = vpop.permute.xlu0 %38 }
  0x82   :  { %v60_v18 = vmul.f32 %v112_v11, %v53_v16  ;;  %v46_v19 = vmul.f32 %v111_v13, %v39_v17 }
  0x84   :  { %v62_v21 = vadd.f32 %v60_v18, %v46_v19 }
  0x85   :  { %v66_v22 = vpop.permute.xlu0 %65 }
  0x86   :  { %v73_v23 = vadd.f32 %v66_v22, %v61_v20  ;;  %v71_v24 = vpop.permute.xlu1 %70 }
  0x87   :  { %v74_v25 = vadd.f32 %v71_v24, %v62_v21 }
  0x88   :  { %v75_v26 = vmax.f32 %v73_v23, 0.0 }
  0x89   :  { %v76_v27 = vmax.f32 %v74_v25, 0.0  ;;  %v80_v28 = vpop.permute.xlu0 %79 }
  0x8a   :  { %v87_v29 = vmul.f32 %v80_v28, %v75_v26  ;;  %v85_v30 = vpop.permute.xlu1 %84 }
  0x8b   :  { %v88_v31 = vmul.f32 %v85_v30, %v76_v27 }
  0x8d   :  { %v89_v32 = vadd.f32 %v88_v31, %v87_v29  ;;  %v99_v40 = vpop.permute.xlu0 %98 }
  0x8e   :  { %v104_v43 = vrot.slane %v99_v40, %v103_v38 }
  0x8f   :  { %v90_v34 = vrot.slane %v89_v32, 4 }
  0x91   :  { %v91_v35 = vadd.f32 %v90_v34, %v89_v32 }
  0x93   :  { %v92_v37 = vrot.slane %v91_v35, 2 }
  0x95   :  { %v93_v39 = vadd.f32 %v92_v37, %v91_v35 }
  0x97   :  { %v94_v41 = vrot.slane %v93_v39, 1 }
  0x99   :  { %v95_v42 = vadd.f32 %v94_v41, %v93_v39 }
  0x9b   :  { %v105_v44 = vadd.f32 %v104_v43, %v95_v42 }
  0x9d   :  { %106 = vst [vmem:[%s185_s5] sm:$0x1] %v105_v44 }

</bundles_post_ra>
